<compile_context>
chip_gen: v7x
topology: tpu7x:2x2x1
jax: 0.10.0
libtpu: 0.0.40
codegen_flags: <defaults>
</compile_context>

<pallas_src>
from functools import partial

import jax
import jax.numpy as jnp
from jax import lax
from jax.experimental import pallas as pl
from jax.experimental.pallas import tpu as pltpu


def _shift_lanes(y, delta, size):
    """Static circular lane shift: out[:, i] = y[:, (i + delta) % size].

    Two static lane slices + a lane concat; Mosaic lowers this to lane
    rotates/selects on the XLU path (same hardware path as pltpu.roll),
    keeping the shift work off the VALU / load-store slots.
    """
    s = delta % size
    if s == 0:
        return y
    return jnp.concatenate([y[:, s:], y[:, :s]], axis=1)


def _conv_glu(y, wa_ref, wg_ref, ba_ref, bg_ref, o_ref, *, K, pad, Wp, Lp,
              dot_dtype):
    """y: (C, Lp) f32 -- flattened zero-padded image (skip already fused)."""
    # "im2col" with spatial on lanes: one lane-shifted copy per tap, stacked
    # tap-major / channel-minor -> (K*K*C, Lp).
    taps = []
    for kh in range(K):
        for kw in range(K):
            d = (kh - pad) * Wp + (kw - pad)
            taps.append(_shift_lanes(y, d, Lp))
    ys = jnp.concatenate(taps, axis=0)                       # (K*K*C, Lp)

    wa = wa_ref[...]
    wg = wg_ref[...]
    if dot_dtype is not None:                                # bf16 MXU path (v6e/v7x)
        ys = ys.astype(dot_dtype)
        wa = wa.astype(dot_dtype)
        wg = wg.astype(dot_dtype)

    # One fat matmul per GLU half; register-resident f32 accumulation.
    a = jnp.dot(wa, ys, preferred_element_type=jnp.float32) + ba_ref[...]
    g = jnp.dot(wg, ys, preferred_element_type=jnp.float32) + bg_ref[...]

    # GLU (elementwise, f32) and a single lane-dense store.
    o_ref[0] = (a * jax.nn.sigmoid(g)).astype(o_ref.dtype)


def _fusion_kernel_skip(x_ref, s_ref, wa_ref, wg_ref, ba_ref, bg_ref, o_ref,
                        **kw):
    y = x_ref[0].astype(jnp.float32) + s_ref[0].astype(jnp.float32)
    _conv_glu(y, wa_ref, wg_ref, ba_ref, bg_ref, o_ref, **kw)


def _fusion_kernel_noskip(x_ref, wa_ref, wg_ref, ba_ref, bg_ref, o_ref, **kw):
    _conv_glu(x_ref[0].astype(jnp.float32), wa_ref, wg_ref, ba_ref, bg_ref,
              o_ref, **kw)


def fusion_layer(x_nchw, weight, bias, skip_nchw=None, *, padding=1,
                 dot_dtype=None):
    """Forward pass of FusionLayer.

    x_nchw: (N, C, H, W); weight: (2C, 2C, K, K) OIHW; bias: (2C,).
    Returns (N, C, H_out, W_out), stride 1 (module default).
    """
    N, C, H, W = x_nchw.shape
    O2, I2, K, Kw = weight.shape
    assert O2 == 2 * C and I2 == 2 * C and K == Kw, "expected Conv2d(2C, 2C, K)"
    p = int(padding)
    Hp, Wp = H + 2 * p, W + 2 * p
    Ho, Wo = Hp - K + 1, Wp - K + 1                    # stride 1
    assert Ho > 0 and Wo > 0
    L = Hp * Wp
    Lp = ((L + 127) // 128) * 128                      # lane-dense flat spatial

    # Fold the channel repeat into the weights; split GLU halves at the
    # weight level.  Row o, column (kh*K + kw)*C + c == w_eff[o, c, kh, kw].
    w_eff = (weight[:, :C] + weight[:, C:]).astype(jnp.float32)   # (2C, C, K, K)
    w_mat = jnp.transpose(w_eff, (0, 2, 3, 1)).reshape(2 * C, K * K * C)
    wa, wg = w_mat[:C], w_mat[C:]                                  # (C, K*K*C)
    ba = bias[:C].astype(jnp.float32).reshape(C, 1)
    bg = bias[C:].astype(jnp.float32).reshape(C, 1)

    def _prep(a_nchw):
        # pad spatially, flatten (no transpose), pad lanes to a 128 multiple.
        ap = jnp.pad(a_nchw, ((0, 0), (0, 0), (p, p), (p, p)))
        ap = ap.reshape(N, C, L)
        return jnp.pad(ap, ((0, 0), (0, 0), (0, Lp - L)))

    xp = _prep(x_nchw)
    data_spec = pl.BlockSpec((1, C, Lp), lambda n: (n, 0, 0))
    if skip_nchw is None:
        kernel = _fusion_kernel_noskip
        data_ops = (xp,)
        data_specs = [data_spec]
    else:
        kernel = _fusion_kernel_skip
        data_ops = (xp, _prep(skip_nchw))
        data_specs = [data_spec, pl.BlockSpec((1, C, Lp), lambda n: (n, 0, 0))]

    out_flat = pl.pallas_call(
        partial(kernel, K=K, pad=p, Wp=Wp, Lp=Lp, dot_dtype=dot_dtype),
        out_shape=jax.ShapeDtypeStruct((N, C, Lp), x_nchw.dtype),
        grid_spec=pltpu.PrefetchScalarGridSpec(
            num_scalar_prefetch=0,
            grid=(N,),
            in_specs=data_specs + [
                pl.BlockSpec((C, K * K * C), lambda n: (0, 0)),   # wa
                pl.BlockSpec((C, K * K * C), lambda n: (0, 0)),   # wg
                pl.BlockSpec((C, 1), lambda n: (0, 0)),           # ba
                pl.BlockSpec((C, 1), lambda n: (0, 0)),           # bg
            ],
            out_specs=pl.BlockSpec((1, C, Lp), lambda n: (n, 0, 0)),
        ),
        compiler_params=pltpu.CompilerParams(
            dimension_semantics=("parallel",)),
    )(*data_ops, wa, wg, ba, bg)

    # Crop the padded positions on the XLA side (output is already NCHW-ish).
    out = out_flat[:, :, :L].reshape(N, C, Hp, Wp)
    return out[:, :, p:p + Ho, p:p + Wo]


def fusion_layer_ref(x, weight, bias, skip=None, *, padding=1):
    """Plain-JAX reference of the PyTorch forward (NCHW)."""
    C = x.shape[1]
    y = x if skip is None else x + skip
    y2 = jnp.concatenate([y, y], axis=1)               # repeat(1, 2, 1, 1)
    z = lax.conv_general_dilated(
        y2, weight, window_strides=(1, 1),
        padding=((padding, padding), (padding, padding)),
        dimension_numbers=("NCHW", "OIHW", "NCHW"))
    z = z + bias.reshape(1, -1, 1, 1)
    return z[:, :C] * jax.nn.sigmoid(z[:, C:])         # F.glu(dim=1)


if __name__ == "__main__":
    N, C, H, W = 2, 4, 16, 16
    K = 3

    key = jax.random.PRNGKey(0)
    kx, ks, kw, kb = jax.random.split(key, 4)

    x = jax.random.normal(kx, (N, C, H, W), dtype=jnp.float32)
    skip = jax.random.normal(ks, (N, C, H, W), dtype=jnp.float32)

    # Deterministic Conv2d(2C, 2C, 3) init (PyTorch-style uniform bound).
    fan_in = (2 * C) * K * K
    bound = 1.0 / (fan_in ** 0.5)
    weight = jax.random.uniform(kw, (2 * C, 2 * C, K, K), jnp.float32,
                                minval=-bound, maxval=bound)
    bias = jax.random.uniform(kb, (2 * C,), jnp.float32,
                              minval=-bound, maxval=bound)

    # Skip-fusion path.
    out = jax.block_until_ready(fusion_layer(x, weight, bias, skip))
    ref = fusion_layer_ref(x, weight, bias, skip)
    assert out.shape == (N, C, H, W)
    assert jnp.allclose(out, ref, atol=1e-4, rtol=1e-4)

    # No-skip path (no zero tensor materialised or DMA'd).
    out2 = jax.block_until_ready(fusion_layer(x, weight, bias, None))
    ref2 = fusion_layer_ref(x, weight, bias, None)
    assert jnp.allclose(out2, ref2, atol=1e-4, rtol=1e-4)

    print("KERNEL_OK")
</pallas_src>

<mosaic_0001>
module attributes {stable_mosaic.version = 11 : i64} {
  func.func @_fusion_kernel_skip(%arg0: i32, %arg1: memref<1x4x384xf32, #tpu.memory_space<vmem>>, %arg2: memref<1x4x384xf32, #tpu.memory_space<vmem>>, %arg3: memref<4x36xf32, #tpu.memory_space<vmem>>, %arg4: memref<4x36xf32, #tpu.memory_space<vmem>>, %arg5: memref<4x1xf32, #tpu.memory_space<vmem>>, %arg6: memref<4x1xf32, #tpu.memory_space<vmem>>, %arg7: memref<1x4x384xf32, #tpu.memory_space<vmem>>) attributes {dimension_semantics = [#tpu.dimension_semantics<parallel>], iteration_bounds = array<i64: 2>, scalar_prefetch = 0 : i64, scratch_operands = 0 : i64, tpu.core_type = #tpu.core_type<tc>, window_params = [{transform_indices = @transform_0, window_bounds = array<i64: 1, 4, 384>}, {transform_indices = @transform_1, window_bounds = array<i64: 1, 4, 384>}, {pipeline_mode = #tpu.pipeline_mode<synchronous>, transform_indices = @transform_2, window_bounds = array<i64: 4, 36>}, {pipeline_mode = #tpu.pipeline_mode<synchronous>, transform_indices = @transform_3, window_bounds = array<i64: 4, 36>}, {pipeline_mode = #tpu.pipeline_mode<synchronous>, transform_indices = @transform_4, window_bounds = array<i64: 4, 1>}, {pipeline_mode = #tpu.pipeline_mode<synchronous>, transform_indices = @transform_5, window_bounds = array<i64: 4, 1>}, {transform_indices = @transform_6, window_bounds = array<i64: 1, 4, 384>}]} {
    %c0 = arith.constant 0 : index
    %c0_0 = arith.constant 0 : index
    %c0_1 = arith.constant 0 : index
    %0 = vector.load %arg1[%c0, %c0_0, %c0_1] : memref<1x4x384xf32, #tpu.memory_space<vmem>>, vector<1x4x384xf32>
    %1 = vector.shape_cast %0 : vector<1x4x384xf32> to vector<4x384xf32>
    %c0_2 = arith.constant 0 : index
    %c0_3 = arith.constant 0 : index
    %c0_4 = arith.constant 0 : index
    %2 = vector.load %arg2[%c0_2, %c0_3, %c0_4] : memref<1x4x384xf32, #tpu.memory_space<vmem>>, vector<1x4x384xf32>
    %3 = vector.shape_cast %2 : vector<1x4x384xf32> to vector<4x384xf32>
    %4 = arith.addf %1, %3 : vector<4x384xf32>
    %5 = vector.extract_strided_slice %4 {offsets = [0, 365], sizes = [4, 19], strides = [1, 1]} : vector<4x384xf32> to vector<4x19xf32>
    %6 = vector.extract_strided_slice %4 {offsets = [0, 0], sizes = [4, 365], strides = [1, 1]} : vector<4x384xf32> to vector<4x365xf32>
    %7 = tpu.concatenate %5, %6 in 1 : vector<4x19xf32>, vector<4x365xf32> -> vector<4x384xf32>
    %8 = vector.extract_strided_slice %4 {offsets = [0, 366], sizes = [4, 18], strides = [1, 1]} : vector<4x384xf32> to vector<4x18xf32>
    %9 = vector.extract_strided_slice %4 {offsets = [0, 0], sizes = [4, 366], strides = [1, 1]} : vector<4x384xf32> to vector<4x366xf32>
    %10 = tpu.concatenate %8, %9 in 1 : vector<4x18xf32>, vector<4x366xf32> -> vector<4x384xf32>
    %11 = vector.extract_strided_slice %4 {offsets = [0, 367], sizes = [4, 17], strides = [1, 1]} : vector<4x384xf32> to vector<4x17xf32>
    %12 = vector.extract_strided_slice %4 {offsets = [0, 0], sizes = [4, 367], strides = [1, 1]} : vector<4x384xf32> to vector<4x367xf32>
    %13 = tpu.concatenate %11, %12 in 1 : vector<4x17xf32>, vector<4x367xf32> -> vector<4x384xf32>
    %14 = vector.extract_strided_slice %4 {offsets = [0, 383], sizes = [4, 1], strides = [1, 1]} : vector<4x384xf32> to vector<4x1xf32>
    %15 = vector.extract_strided_slice %4 {offsets = [0, 0], sizes = [4, 383], strides = [1, 1]} : vector<4x384xf32> to vector<4x383xf32>
    %16 = tpu.concatenate %14, %15 in 1 : vector<4x1xf32>, vector<4x383xf32> -> vector<4x384xf32>
    %17 = vector.extract_strided_slice %4 {offsets = [0, 1], sizes = [4, 383], strides = [1, 1]} : vector<4x384xf32> to vector<4x383xf32>
    %18 = vector.extract_strided_slice %4 {offsets = [0, 0], sizes = [4, 1], strides = [1, 1]} : vector<4x384xf32> to vector<4x1xf32>
    %19 = tpu.concatenate %17, %18 in 1 : vector<4x383xf32>, vector<4x1xf32> -> vector<4x384xf32>
    %20 = vector.extract_strided_slice %4 {offsets = [0, 17], sizes = [4, 367], strides = [1, 1]} : vector<4x384xf32> to vector<4x367xf32>
    %21 = vector.extract_strided_slice %4 {offsets = [0, 0], sizes = [4, 17], strides = [1, 1]} : vector<4x384xf32> to vector<4x17xf32>
    %22 = tpu.concatenate %20, %21 in 1 : vector<4x367xf32>, vector<4x17xf32> -> vector<4x384xf32>
    %23 = vector.extract_strided_slice %4 {offsets = [0, 18], sizes = [4, 366], strides = [1, 1]} : vector<4x384xf32> to vector<4x366xf32>
    %24 = vector.extract_strided_slice %4 {offsets = [0, 0], sizes = [4, 18], strides = [1, 1]} : vector<4x384xf32> to vector<4x18xf32>
    %25 = tpu.concatenate %23, %24 in 1 : vector<4x366xf32>, vector<4x18xf32> -> vector<4x384xf32>
    %26 = vector.extract_strided_slice %4 {offsets = [0, 19], sizes = [4, 365], strides = [1, 1]} : vector<4x384xf32> to vector<4x365xf32>
    %27 = vector.extract_strided_slice %4 {offsets = [0, 0], sizes = [4, 19], strides = [1, 1]} : vector<4x384xf32> to vector<4x19xf32>
    %28 = tpu.concatenate %26, %27 in 1 : vector<4x365xf32>, vector<4x19xf32> -> vector<4x384xf32>
    %29 = tpu.concatenate %7, %10, %13, %16, %4, %19, %22, %25, %28 in 0 : vector<4x384xf32>, vector<4x384xf32>, vector<4x384xf32>, vector<4x384xf32>, vector<4x384xf32>, vector<4x384xf32>, vector<4x384xf32>, vector<4x384xf32>, vector<4x384xf32> -> vector<36x384xf32>
    %c0_5 = arith.constant 0 : index
    %c0_6 = arith.constant 0 : index
    %30 = vector.load %arg3[%c0_5, %c0_6] : memref<4x36xf32, #tpu.memory_space<vmem>>, vector<4x36xf32>
    %c0_7 = arith.constant 0 : index
    %c0_8 = arith.constant 0 : index
    %31 = vector.load %arg4[%c0_7, %c0_8] : memref<4x36xf32, #tpu.memory_space<vmem>>, vector<4x36xf32>
    %cst = arith.constant dense<0.000000e+00> : vector<4x384xf32>
    %32 = tpu.matmul %30, %29, %cst {dimension_numbers = #tpu.dot_dimension_numbers<[1], [0], [0], [1], [0, 0, 1, 1], [], []>} : vector<4x36xf32>, vector<36x384xf32>, vector<4x384xf32> -> vector<4x384xf32>
    %c0_9 = arith.constant 0 : index
    %c0_10 = arith.constant 0 : index
    %33 = vector.load %arg5[%c0_9, %c0_10] : memref<4x1xf32, #tpu.memory_space<vmem>>, vector<4x1xf32>
    %34 = vector.broadcast %33 : vector<4x1xf32> to vector<4x384xf32>
    %35 = arith.addf %32, %34 : vector<4x384xf32>
    %cst_11 = arith.constant dense<0.000000e+00> : vector<4x384xf32>
    %36 = tpu.matmul %31, %29, %cst_11 {dimension_numbers = #tpu.dot_dimension_numbers<[1], [0], [0], [1], [0, 0, 1, 1], [], []>} : vector<4x36xf32>, vector<36x384xf32>, vector<4x384xf32> -> vector<4x384xf32>
    %c0_12 = arith.constant 0 : index
    %c0_13 = arith.constant 0 : index
    %37 = vector.load %arg6[%c0_12, %c0_13] : memref<4x1xf32, #tpu.memory_space<vmem>>, vector<4x1xf32>
    %38 = vector.broadcast %37 : vector<4x1xf32> to vector<4x384xf32>
    %39 = arith.addf %36, %38 : vector<4x384xf32>
    %40 = arith.negf %39 : vector<4x384xf32>
    %41 = math.exp %40 : vector<4x384xf32>
    %cst_14 = arith.constant 1.000000e+00 : f32
    %42 = vector.broadcast %cst_14 : f32 to vector<4x384xf32>
    %43 = arith.addf %42, %41 : vector<4x384xf32>
    %44 = arith.divf %42, %43 : vector<4x384xf32>
    %45 = arith.mulf %35, %44 : vector<4x384xf32>
    %c0_15 = arith.constant 0 : index
    %c0_16 = arith.constant 0 : index
    %c0_17 = arith.constant 0 : index
    %46 = vector.load %arg7[%c0_15, %c0_16, %c0_17] : memref<1x4x384xf32, #tpu.memory_space<vmem>>, vector<1x4x384xf32>
    %47 = vector.shape_cast %46 : vector<1x4x384xf32> to vector<4x384xf32>
    %48 = vector.shape_cast %45 : vector<4x384xf32> to vector<1x4x384xf32>
    tpu.vector_store %arg7[%c0_15, %c0_16, %c0_17], %48 {strides = array<i32>} : memref<1x4x384xf32, #tpu.memory_space<vmem>>, vector<1x4x384xf32>,
    return
  }
  func.func @transform_0(%arg0: i32) -> (i32, i32, i32) {
    %c0_i32 = arith.constant 0 : i32
    %c0_i32_0 = arith.constant 0 : i32
    %c0_i32_1 = arith.constant 0 : i32
    return %arg0, %c0_i32, %c0_i32_0 : i32, i32, i32
  }
  func.func @transform_1(%arg0: i32) -> (i32, i32, i32) {
    %c0_i32 = arith.constant 0 : i32
    %c0_i32_0 = arith.constant 0 : i32
    %c0_i32_1 = arith.constant 0 : i32
    return %arg0, %c0_i32, %c0_i32_0 : i32, i32, i32
  }
  func.func @transform_2(%arg0: i32) -> (i32, i32) {
    %c0_i32 = arith.constant 0 : i32
    %c0_i32_0 = arith.constant 0 : i32
    %c0_i32_1 = arith.constant 0 : i32
    return %c0_i32, %c0_i32_0 : i32, i32
  }
  func.func @transform_3(%arg0: i32) -> (i32, i32) {
    %c0_i32 = arith.constant 0 : i32
    %c0_i32_0 = arith.constant 0 : i32
    %c0_i32_1 = arith.constant 0 : i32
    return %c0_i32, %c0_i32_0 : i32, i32
  }
  func.func @transform_4(%arg0: i32) -> (i32, i32) {
    %c0_i32 = arith.constant 0 : i32
    %c0_i32_0 = arith.constant 0 : i32
    %c0_i32_1 = arith.constant 0 : i32
    return %c0_i32, %c0_i32_0 : i32, i32
  }
  func.func @transform_5(%arg0: i32) -> (i32, i32) {
    %c0_i32 = arith.constant 0 : i32
    %c0_i32_0 = arith.constant 0 : i32
    %c0_i32_1 = arith.constant 0 : i32
    return %c0_i32, %c0_i32_0 : i32, i32
  }
  func.func @transform_6(%arg0: i32) -> (i32, i32, i32) {
    %c0_i32 = arith.constant 0 : i32
    %c0_i32_0 = arith.constant 0 : i32
    %c0_i32_1 = arith.constant 0 : i32
    return %arg0, %c0_i32, %c0_i32_0 : i32, i32, i32
  }
}

</mosaic_0001>

<bundles_post_ra>
// kernel: tpu_custom_call.1
= control target key start
LH: loop header
LB: loop body
LE: loop exit
PB: predicated region body
PF: predicated region fallthrough
CT: control target
= control target key end

     0   :  { %11 = vsyncpa [#allocation3], 0  ;;  %s1587_s0 = inlined_call_operand.hbm [shape: f32[2,4,384], index: 0, kind: input, shape index: {}]   ;;  %s1588_s1 = inlined_call_operand.hbm [shape: f32[2,4,384], index: 1, kind: input, shape index: {}]   ;;  %s1589_s2 = inlined_call_operand.vmem [shape: f32[4,36], index: 2, kind: input, shape index: {}]   ;;  %s1590_s3 = inlined_call_operand.vmem [shape: f32[4,36], index: 3, kind: input, shape index: {}]   ;;  %s1591_s4 = inlined_call_operand.vmem [shape: f32[4,1], index: 4, kind: input, shape index: {}]   ;;  %s1592_s5 = inlined_call_operand.vmem [shape: f32[4,1], index: 5, kind: input, shape index: {}]   ;;  %s1593_s6 = inlined_call_operand.hbm [shape: f32[2,4,384], index: 6, kind: output, shape index: {}]  }
   0x1   :  { %13 = vsyncpa [#allocation3 + $0x1], 0 }
   0x2   :  { %14 = vsyncpa [#allocation6], 0 }
   0x3   :  { %16 = vsyncpa [#allocation6 + $0x1], 0 }
   0x4   :  { %17 = vsyncpa [#allocation4], 0 }
   0x5   :  { %19 = vsyncpa [#allocation4 + $0x1], 0  ;;  %s1292_s21 = smov 0   ;;  %s1294_s22 = smov 0  }
   0x6   :  { %s1296_s23 = smov 0   ;;  %s1298_s24 = smov 0  }
   0x7 LB: > { %s1313_s25 = sadd.s32 4294967295, %s1240_s24   ;;  %s904_s26 = sadd.s32 4294967294, %s1240_s24   ;;  %s1240_s24 = sphi %s1298_s24, %s1611_s24   ;;  %s1236_s23 = sphi %s1296_s23, %s1610_s23   ;;  %s1232_s22 = sphi %s1294_s22, %s1609_s22   ;;  %s1228_s21 = sphi %s1292_s21, %s1608_s21  }
   0x8   : > { %s1317_s27 = sadd.s32 1, %s1240_s24   ;;  %s32_s28 = sadd.s32 1, %s1236_s23 }
   0x9   : > { %s29_s29 = ssub.s32 %s1240_s24, %s1317_s27  ;;  %p39_p0 = scmp.ne.s32.totalorder %s1236_s23, %s1232_s22 }
   0xa   : > { %p30_p1 = scmp.eq.s32.totalorder %s29_s29, 0  ;;  %p40_p2 = scmp.eq.s32.totalorder %s1240_s24, 0 }
   0xb   : > { %p45_p3 = scmp.ne.s32.totalorder %s1232_s22, %s1228_s21  ;;  %p46_p4 = scmp.eq.s32.totalorder %s1313_s25, 0 }
   0xc   : > { %s1329_s30 = scalar_select %p30_p1, %s1236_s23, %s32_s28  }
   0xd   : > { %p41_p5 = por %p40_p2, %p39_p0  ;;  %p1331_p6 = por %p46_p4, %p45_p3 }
   0xe   : > { %p179_p7 = scmp.eq.s32.totalorder %s1313_s25, 1  ;;  %p185_p8 = scmp.eq.s32.totalorder %s904_s26, 1 }
   0xf   : > { %s1596_s7 = scalar_select %p1331_p6, 1, 0 }
  0x10   : > { %p1015_p10 = scmp.lt.s32.totalorder %s1240_s24, 2  ;;  %p1338_p11 = por %p179_p7, %p39_p0 }
  0x11   : > { %p1342_p12 = por %p185_p8, %p45_p3  ;;  %s1347_s10 = sand.u32 1, %s1236_s23  }
  0x12   : > { %s1597_s8 = scalar_select %p1338_p11, 1, 0 }
  0x13   : > { %s1598_s9 = scalar_select %p1342_p12, 1, 0 }
  0x14   : > { %s993_s11 = smul.u32 192, %s1240_s24  ;;  %p1358_p13 = pnand %p1015_p10, %p41_p5 }
  0x15   : > { %s992_s12 = smul.u32 12, %s1347_s10  ;;  %s218_s19 = scalar_lea.sflag [#allocation3], %s1347_s10 }
  0x16   : > { %s1356_s15 = scalar_lea.hbm %s1587_s0, %s993_s11  ;;  %p1112_p3 = pneg %p1358_p13 }
  0x17   : > { %s221_s17 = scalar_lea.vmem [#allocation2], %s992_s12  ;;  %s1110_s20 = scalar_lea.hbm %s1356_s15, 192 }
  0x18   : > { %s229_s18 = sshll.u32 %s221_s17, 4  ;;  %p1111_p2 = scmp.ne.s32.totalorder %s1356_s15, %s1110_s20  ;;  %s1365_s18 = int_to_ptr.vmem [resolvable:$true] %s229_s18 }
  0x19   : > { %s1115_s29 = scalar_lea.hbm %s1587_s0, 384  ;;  %p1116_p7 = scmp.lt.u32.totalorder %s1356_s15, %s1587_s0 }
  0x1a   : > { %p1113_p4 = pnand %p1112_p3, %p1111_p2  ;;  %p1117_p8 = scmp.lt.u32.totalorder %s1115_s29, %s1110_s20 }
  0x1b   : > { %p1119_p9 = scmp.lt.u32.totalorder %s1110_s20, %s1356_s15 }
  0x1c   : > { %p1114_p5 = pneg %p1113_p4  ;;  %p1118_p10 = por %p1117_p8, %p1116_p7 }
  0x1e   : > { %p1120_p0 = por %p1119_p9, %p1118_p10 }
  0x20   : > { %p1121_p1 = pnand %p1120_p0, %p1114_p5 }
  0x22   : > { %1124 = shalt.err (!%p1121_p1)
}
  0x23   : > { %s1125_s17 = scalar_lea.vmem %s1365_s18, 192  ;;  %s1242_s26 = smov [#allocation2]  }
  0x24   : > { %p1126_p2 = scmp.ne.s32.totalorder %s1365_s18, %s1125_s17  ;;  %s1130_s28 = sshll.u32 %s1242_s26, 4  ;;  %s1131_s28 = int_to_ptr.vmem [resolvable:$false] %s1130_s28 }
  0x25   : > { %s1132_s13 = scalar_lea.vmem %s1131_s28, 384  ;;  %p1133_p11 = scmp.lt.s32.totalorder %s1365_s18, %s1131_s28 }
  0x26   : > { %p1128_p4 = pnand %p1126_p2, %p1112_p3  ;;  %p1134_p7 = scmp.lt.s32.totalorder %s1132_s13, %s1125_s17 }
  0x28   : > { %p1129_p12 = pneg %p1128_p4  ;;  %p1135_p8 = por %p1134_p7, %p1133_p11 }
  0x2a   : > { %p1136_p9 = pnand %p1135_p8, %p1129_p12 }
  0x2c   : > { %1139 = shalt.err (!%p1136_p9)
}
  0x2d   : > { %1007 = dma.hbm_to_vmem [thread:$0]  (!%p1358_p13), %s1356_s15, 192, %s1365_s18, %s218_s19  }
  0x2e   : > { %p1600_p0 = scmp.lt.s32.totalorder %s1240_s24, 3  ;;  %p1601_p1 = scmp.ge.s32.totalorder %s1240_s24, 1 }
  0x2f   : > { %s1407_s17 = scalar_lea.hbm %s1588_s1, %s993_s11  ;;  %s240_s26 = scalar_lea.vmem [#allocation5], %s992_s12 }
  0x30   : > { %p1398_p5 = pnand %p1601_p1, %p1600_p0  ;;  %s248_s28 = sshll.u32 %s240_s26, 4  ;;  %s249_s28 = int_to_ptr.vmem [resolvable:$true] %s248_s28 }
  0x31   : > { %s237_s15 = scalar_lea.sflag [#allocation6], %s1347_s10  ;;  %s1140_s18 = scalar_lea.hbm %s1407_s17, 192 }
  0x32   : > { %s1602_s20 = scalar_select %p1398_p5, 1, 0 }
  0x33   : > { %p1141_p11 = scmp.ne.s32.totalorder %s1407_s17, %s1140_s18  ;;  %s1145_s11 = scalar_lea.hbm %s1588_s1, 384 }
  0x34   : > { %p1146_p2 = scmp.lt.u32.totalorder %s1407_s17, %s1588_s1  ;;  %p1147_p4 = scmp.lt.u32.totalorder %s1145_s11, %s1140_s18 }
  0x35   : > { %p1143_p12 = pnand %p1141_p11, %p1112_p3  ;;  %p1149_p8 = scmp.lt.u32.totalorder %s1140_s18, %s1407_s17 }
  0x36   : > { %p1148_p7 = por %p1147_p4, %p1146_p2 }
  0x37   : > { %p1144_p10 = pneg %p1143_p12 }
  0x38   : > { %p1150_p9 = por %p1149_p8, %p1148_p7 }
  0x3a   : > { %p1151_p0 = pnand %p1150_p9, %p1144_p10 }
  0x3c   : > { %1154 = shalt.err (!%p1151_p0)
}
  0x3d   : > { %s1155_s10 = scalar_lea.vmem %s249_s28, 192  ;;  %s1243_s12 = smov [#allocation5]  }
  0x3e   : > { %p1156_p1 = scmp.ne.s32.totalorder %s249_s28, %s1155_s10  ;;  %s1160_s26 = sshll.u32 %s1243_s12, 4  ;;  %s1161_s26 = int_to_ptr.vmem [resolvable:$false] %s1160_s26 }
  0x3f   : > { %s1162_s19 = scalar_lea.vmem %s1161_s26, 384  ;;  %p1163_p6 = scmp.lt.s32.totalorder %s249_s28, %s1161_s26 }
  0x40   : > { %p1158_p11 = pnand %p1156_p1, %p1112_p3  ;;  %p1164_p5 = scmp.lt.s32.totalorder %s1162_s19, %s1155_s10 }
  0x42   : > { %p1159_p12 = pneg %p1158_p11  ;;  %p1165_p2 = por %p1164_p5, %p1163_p6 }
  0x44   : > { %p1166_p4 = pnand %p1165_p2, %p1159_p12 }
  0x46   : > { %1169 = shalt.err (!%p1166_p4)
}
  0x47   : > { %1010 = dma.hbm_to_vmem [thread:$0]  (!%p1358_p13), %s1407_s17, 192, %s249_s28, %s237_s15  }
  0x48   : > { %p1603_p10 = scmp.ne.s32.totalorder %s1602_s20, 0 }
  0x49   : > { %s1434_s18 = sand.u32 (!%p1603_p10), 1, %s1232_s22   ;;  %p1604_p6 = scmp.ne.s32.totalorder (!%p1603_p10), %s1596_s7, 0 }
  0x4a   : > { %257 = sbr.rel (%p1603_p10) target bundleno = 509 (0x1fd), region = 44  ;;  %s260_s11 = scalar_lea.sflag (!%p1603_p10), [#allocation3], %s1434_s18 }
  0x4b   : > { %s1437_s13 = smul.u32 (!%p1603_p10), 12, %s1434_s18 }
  0x4d   : > { %s263_s29 = scalar_lea.vmem (!%p1603_p10), [#allocation2], %s1437_s13 }
  0x51   : > { %1215 = dma.done.wait (%p1604_p6), %s260_s11, 192  }
  0x52   : > { %1217 = vsyncadd (%p1604_p6), %s260_s11, 4294967104  ;;  %s269_s16 = scalar_lea.sflag [#allocation6], %s1434_s18  ;;  %s272_s20 = scalar_lea.vmem [#allocation5], %s1437_s13 }
  0x53   : > { %1219 = dma.done.wait (%p1604_p6), %s269_s16, 192  }
  0x54   : > { %1221 = vsyncadd (%p1604_p6), %s269_s16, 4294967104  ;;  %v307_v0 = vld [vmem:[%s263_s29 + $0x8] sm:$0xf]  ;;  %v309_v1 = vld [vmem:[%s272_s20 + $0x8] sm:$0xf]  ;;  %s1244_s17 = smov 19  }
  0x55   : > { %v306_v2 = vld [vmem:[%s263_s29] sm:$0xff]  ;;  %v1451_v3 = vadd.f32 %v309_v1, %v307_v0  ;;  %v308_v4 = vld [vmem:[%s272_s20] sm:$0xff]  ;;  %s1245_s28 = smov 18   ;;  %s1246_s7 = smov 1   ;;  %v1247_v8 = vmov 0.0|0.0   ;;  %v1251_v10 = vmov 0.0  }
  0x56   : > { %v1453_v5 = vadd.f32 %v308_v4, %v306_v2  ;;  %972 = vmatprep.subr.bf16.mxu1 %v1247_v8  ;;  %s1248_s15 = smov 17   ;;  %s1249_s14 = smov 110   ;;  %542 = vmatprep.mubr.f32.mxu0 %v1251_v10  ;;  %vm1253_vm0 = vmmov 0   ;;  %v461_v11 = vld [vmem:[%s1591_s4] sm:$0xf]  ;;  %v1255_v13 = vmov 0  }
  0x57   : > { %313 = vrot.lane.b32.xlu0 %v1451_v3, %s1244_s17  ;;  %329 = vrot.lane.b32.xlu1 %v1451_v3, %s1245_s28  ;;  %s1250_s10 = smov 127   ;;  %s1252_s12 = smov 111   ;;  %v619_v12 = vld [vmem:[%s1592_s5] sm:$0xf]  ;;  %vm336_vm1 = vcmask 146432   ;;  %vm362_vm2 = vcmask 7168  }
  0x58   : > { %v1459_v6 = vcombine.high %v1453_v5, %v1453_v5  ;;  %948 = vmatprep.mubr.msk.f32.mxu1 %vm1253_vm0, %v1251_v10  ;;  %s1254_s26 = smov 109   ;;  %1097 = vset.pattern.permute.xlu0 %v1255_v13  ;;  %vm322_vm3 = vcmask 154624   ;;  %vm348_vm4 = vcmask 138240   ;;  %vm446_vm5 = vcmask 1043456   ;;  %s797_s11 = scalar_lea.sflag [#allocation4], %s1434_s18 }
  0x59   : > { %1096 = vset.pattern.permute.xlu1 %v1255_v13  ;;  %vm373_vm6 = vcmask 1039360   ;;  %vm399_vm7 = vcmask 900096   ;;  %vm385_vm8 = vcmask 908288   ;;  %vm411_vm9 = vcmask 891904   ;;  %p1605_p3 = scmp.ne.s32.totalorder %s1597_s8, 0 }
  0x5a   : > { %v1061_v7 = vpack.i.bf16 %v1459_v6, %v1453_v5  ;;  %v1086_v9 = vpack.i.bf16 %v1451_v3, %v1459_v6  ;;  %vm467_vm10 = vcmask 293888  }
  0x5b   : > { %355 = vrot.lane.b32.xlu1 %v1451_v3, %s1246_s7 }
  0x5c   : > { %1062 = vrot.lane.b32.xlu0 %v1061_v7, %s1245_s28 }
  0x5f   : > { %341 = vrot.lane.b32.xlu1 %v1451_v3, %s1248_s15 }
  0x60   : > { %1067 = vrot.lane.b32.xlu0 %v1061_v7, %s1246_s7 }
  0x63   : > { %1077 = vrot.lane.b32.xlu1 %v1061_v7, %s1248_s15  ;;  %s997_s15 = smul.u32 192, %s1313_s25 }
  0x64   : > { %1072 = vrot.lane.b32.xlu0 %v1061_v7, %s1244_s17 }
  0x65   : > { %s1543_s19 = scalar_lea.hbm %s1593_s6, %s997_s15 }
  0x67   : > { %1087 = vrot.lane.b32.xlu1 %v1086_v9, %s1249_s14 }
  0x68   : > { %1082 = vrot.lane.b32.xlu0 %v1086_v9, %s1250_s10 }
  0x6b   : > { %393 = vrot.lane.b32.xlu1 %v1453_v5, %s1249_s14  ;;  %s305_s14 = scalar_lea.vmem [#allocation7], %s1437_s13  ;;  %s1256_s13 = smov [#allocation7]  }
  0x6c   : > { %367 = vrot.lane.b32.xlu0 %v1453_v5, %s1250_s10  ;;  %s811_s10 = sshll.u32 %s305_s14, 4  ;;  %s1174_s29 = sshll.u32 %s1256_s13, 4  ;;  %s1545_s10 = int_to_ptr.vmem [resolvable:$true] %s811_s10  ;;  %s1175_s29 = int_to_ptr.vmem [resolvable:$false] %s1174_s29 }
  0x6d   : > { %s1170_s25 = scalar_lea.vmem %s1545_s10, 192  ;;  %s1176_s16 = scalar_lea.vmem %s1175_s29, 384 }
  0x6e   : > { %p1171_p13 = scmp.ne.s32.totalorder %s1545_s10, %s1170_s25  ;;  %p1177_p8 = scmp.lt.s32.totalorder %s1545_s10, %s1175_s29 }
  0x6f   : > { %379 = vrot.lane.b32.xlu1 %v1453_v5, %s1252_s12  ;;  %p1178_p9 = scmp.lt.s32.totalorder %s1176_s16, %s1170_s25 }
  0x70   : > { %1092 = vrot.lane.b32.xlu0 %v1086_v9, %s1252_s12  ;;  %p1172_p5 = pnand %p1171_p13, %p1605_p3 }
  0x71   : > { %p1179_p0 = por %p1178_p9, %p1177_p8 }
  0x72   : > { %p1173_p7 = pneg %p1172_p5 }
  0x73   : > { %409 = vrot.lane.b32.xlu1 %v1451_v3, %s1254_s26 }
  0x74   : > { %407 = vrot.lane.b32.xlu0 %v1459_v6, %s1254_s26  ;;  %p1180_p1 = pnand %p1179_p0, %p1173_p7 }
  0x77   : > { %622 = vperm.xlu1 %1096, %v619_v12  }
  0x78   : > { %405 = vrot.lane.b32.xlu0 %v1453_v5, %s1254_s26 }
  0x7c   : > { %464 = vperm.xlu0 %1097, %v461_v11  }
  0xc9   : > { %v314_v14 = vpop.permute.xlu0 %313  ;;  %v330_v15 = vpop.permute.xlu1 %329 }
  0xcd   : > { %v356_v16 = vpop.permute.xlu1 %355 }
  0xce   : > { %v1063_v17 = vpop.permute.xlu0 %1062 }
  0xcf   : > { %v1065_v18 = vunpack.i.h.bf16 %v1063_v17  ;;  %v1064_v19 = vunpack.i.l.bf16 %v1063_v17 }
  0xd1   : > { %v342_v20 = vpop.permute.xlu1 %341  ;;  %v338_v24 = vsel %vm336_vm1, %v1065_v18, %v330_v15  ;;  %v337_v25 = vsel %vm336_vm1, %v1064_v19, %v1065_v18  ;;  %v340_v29 = vsel %vm336_vm1, %v330_v15, %v1064_v19 }
  0xd2   : > { %v1068_v21 = vpop.permute.xlu0 %1067  ;;  %v420_v37 = vrot.slane %v338_v24, 4  ;;  %v419_v38 = vrot.slane %v337_v25, 4  ;;  %v418_v46 = vrot.slane %v340_v29, 4 }
  0xd3   : > { %v1070_v22 = vunpack.i.h.bf16 %v1068_v21  ;;  %v1069_v23 = vunpack.i.l.bf16 %v1068_v21 }
  0xd5   : > { %v364_v26 = vsel %vm362_vm2, %v1070_v22, %v356_v16  ;;  %v363_v27 = vsel %vm362_vm2, %v1069_v23, %v1070_v22  ;;  %v1078_v28 = vpop.permute.xlu1 %1077  ;;  %v366_v30 = vsel %vm362_vm2, %v356_v16, %v1069_v23 }
  0xd6   : > { %v1080_v31 = vunpack.i.h.bf16 %v1078_v28  ;;  %v1073_v32 = vpop.permute.xlu0 %1072  ;;  %v427_v33 = vrot.slane %v364_v26, 4  ;;  %v1079_v34 = vunpack.i.l.bf16 %v1078_v28  ;;  %v426_v39 = vrot.slane %v363_v27, 4 }
  0xd7   : > { %v1075_v35 = vunpack.i.h.bf16 %v1073_v32  ;;  %v1074_v36 = vunpack.i.l.bf16 %v1073_v32  ;;  %v425_v47 = vrot.slane %v366_v30, 4 }
  0xd8   : > { %v350_v40 = vsel %vm348_vm4, %v1080_v31, %v342_v20  ;;  %v349_v43 = vsel %vm348_vm4, %v1079_v34, %v1080_v31  ;;  %v354_v58 = vsel %vm348_vm4, %v342_v20, %v1079_v34 }
  0xd9   : > { %v1088_v41 = vpop.permute.xlu1 %1087  ;;  %v323_v42 = vsel %vm322_vm3, %v1074_v36, %v1075_v35  ;;  %v324_v44 = vsel %vm322_vm3, %v1075_v35, %v314_v14  ;;  %v452_v45 = vsel %vm446_vm5, %v350_v40, %v427_v33  ;;  %v451_v50 = vsel %vm446_vm5, %v349_v43, %v426_v39 }
  0xda   : > { %v1083_v48 = vpop.permute.xlu0 %1082  ;;  %v448_v49 = vsel %vm446_vm5, %v323_v42, %v419_v38  ;;  %v449_v54 = vsel %vm446_vm5, %v324_v44, %v420_v37  ;;  %v1090_v55 = vunpack.i.h.bf16 %v1088_v41  ;;  %v328_v57 = vsel %vm322_vm3, %v314_v14, %v1074_v36  ;;  %v459_v37 = vld [vmem:[%s1589_s2] sm:$0xf] }
  0xdb   : > { %v1085_v51 = vunpack.i.h.bf16 %v1083_v48  ;;  %v1084_v52 = vunpack.i.l.bf16 %v1083_v48  ;;  %v1490_v53 = vpack.c.bf16 %v451_v50, %v448_v49  ;;  %v973_v56 = vpack.c.bf16 %v452_v45, %v449_v54  ;;  %v460_v38 = vld [vmem:[%s1590_s3] sm:$0xf] }
  0xdc   : > { %v1089_v59 = vunpack.i.l.bf16 %v1088_v41  ;;  %v447_v61 = vsel %vm446_vm5, %v328_v57, %v418_v46  ;;  %v450_v62 = vsel %vm446_vm5, %v354_v58, %v425_v47 }
  0xdd   : > { %965 = vmatprep.subr.bf16.mxu0 %v1490_v53  ;;  %v375_v60 = vsel %vm373_vm6, %v1084_v52, %v1085_v51  ;;  %v394_v63 = vpop.permute.xlu1 %393  ;;  %974 = vmatpush3.bf16.msra.mxu1 %v973_v56  ;;  %v966_v1 = vpack.c.bf16 %v450_v62, %v447_v61 }
  0xde   : > { %v368_v0 = vpop.permute.xlu0 %367  ;;  %975 = vmatprep.subr.bf16.mxu1 %v1247_v8  ;;  %v434_v7 = vrot.slane %v375_v60, 4  ;;  %v400_v11 = vsel %vm399_vm7, %v394_v63, %v1089_v59  ;;  %v401_v12 = vsel %vm399_vm7, %v1089_v59, %v1090_v55  ;;  %v404_v13 = vsel %vm399_vm7, %v1090_v55, %v394_v63 }
  0xdf   : > { %v374_v2 = vsel %vm373_vm6, %v368_v0, %v1084_v52  ;;  %v378_v4 = vsel %vm373_vm6, %v1085_v51, %v368_v0  ;;  %967 = vmatpush1.bf16.msra.mxu0 %v966_v1  ;;  %v440_v19 = vrot.slane %v400_v11, 4  ;;  %v441_v20 = vrot.slane %v401_v12, 4 }
  0xe0   : > { %v435_v9 = vrot.slane %v378_v4, 4  ;;  %v433_v15 = vrot.slane %v374_v2, 4  ;;  %v442_v21 = vrot.slane %v404_v13, 4  ;;  %v454_v22 = vsel %vm446_vm5, %v1459_v6, %v434_v7 }
  0xe1   : > { %v380_v14 = vpop.permute.xlu1 %379 }
  0xe2   : > { %v1093_v16 = vpop.permute.xlu0 %1092  ;;  %v455_v27 = vsel %vm446_vm5, %v1451_v3, %v435_v9  ;;  %v453_v32 = vsel %vm446_vm5, %v1453_v5, %v433_v15 }
  0xe3   : > { %v1095_v17 = vunpack.i.h.bf16 %v1093_v16  ;;  %v1094_v18 = vunpack.i.l.bf16 %v1093_v16 }
  0xe5   : > { %v386_v23 = vsel %vm385_vm8, %v380_v14, %v1094_v18  ;;  %v387_v24 = vsel %vm385_vm8, %v1094_v18, %v1095_v17  ;;  %v392_v25 = vsel %vm385_vm8, %v1095_v17, %v380_v14  ;;  %v410_v26 = vpop.permute.xlu1 %409 }
  0xe6   : > { %v456_v28 = vsel %vm446_vm5, %v386_v23, %v440_v19  ;;  %v458_v29 = vsel %vm446_vm5, %v392_v25, %v442_v21  ;;  %v408_v30 = vpop.permute.xlu0 %407  ;;  %v457_v31 = vsel %vm446_vm5, %v387_v24, %v441_v20 }
  0xe7   : > { %v968_v33 = vpack.c.bf16 %v457_v31, %v454_v22  ;;  %v976_v34 = vpack.c.bf16 %v458_v29, %v455_v27  ;;  %v970_v6 = vpack.c.bf16 %v456_v28, %v453_v32  ;;  %v413_v35 = vsel %vm411_vm9, %v408_v30, %v410_v26 }
  0xe9   : > { %969 = vmatprep.subr.bf16.mxu0 %v968_v33  ;;  %977 = vmatpush3.bf16.msra.mxu1 %v976_v34 }
  0xea   : > { %v406_v36 = vpop.permute.xlu0 %405  ;;  %971 = vmatpush1.bf16.msra.mxu0 %v970_v6  ;;  %946 = vmatprep.subr.mxu1 %v1251_v10 }
  0xeb   : > { %v416_v3 = vsel %vm411_vm9, %v410_v26, %v406_v36  ;;  %910 = vmatprep.subr.msk.mxu0 %vm446_vm5, %v413_v35  ;;  %v412_v5 = vsel %vm411_vm9, %v406_v36, %v408_v30 }
  0xed   : > { %947 = vmatpush3.msk.msra.mxu1 %vm446_vm5, %v416_v3 }
  0xee   : > { %911 = vmatpush1.msk.msra.mxu0 %vm446_vm5, %v412_v5  ;;  %986 = vmatprep.subr.bf16.mxu1 %v1247_v8 }
  0xef   : > { %912 = vmatmul.mubr.msk.f32.vlgmr.msra.gmra.mrb[0].mxu0 %vm467_vm10, %v459_v37  ;;  %949 = vmatmul.mubr.msk.f32.vlgmr.msra.gmra.mrb[0].mxu1 %vm467_vm10, %v459_v37 }
  0xf0   : > { %979 = vmatprep.subr.bf16.mxu0 %v1490_v53  ;;  %988 = vmatpush3.bf16.msra.mxu1 %v973_v56 }
  0xf1   : > { %981 = vmatpush1.bf16.msra.mxu0 %v966_v1  ;;  %989 = vmatprep.subr.bf16.mxu1 %v1247_v8 }
  0xf2   : > { %983 = vmatprep.subr.bf16.mxu0 %v968_v33  ;;  %961 = vmatprep.mubr.msk.f32.mxu1 %vm1253_vm0, %v1251_v10 }
  0xf3   : > { %692 = vmatprep.mubr.f32.mxu0 %v1251_v10 }
  0xf4   : > { %991 = vmatpush3.bf16.msra.mxu1 %v976_v34 }
  0xf5   : > { %985 = vmatpush1.bf16.msra.mxu0 %v970_v6  ;;  %959 = vmatprep.subr.mxu1 %v1251_v10 }
  0xf6   : > { %915 = vmatprep.subr.msk.mxu0 %vm446_vm5, %v413_v35  ;;  %v623_v42 = vpop.permute.xlu1 %622 }
  0xf8   : > { %960 = vmatpush3.msk.msra.mxu1 %vm446_vm5, %v416_v3 }
  0xf9   : > { %916 = vmatpush1.msk.msra.mxu0 %vm446_vm5, %v412_v5  ;;  %962 = vmatmul.mubr.msk.f32.vlgmr.msra.gmra.mrb[2].mxu1 %vm467_vm10, %v460_v38 }
  0xfa   : > { %917 = vmatmul.mubr.msk.f32.vlgmr.msra.gmra.mrb[2].mxu0 %vm467_vm10, %v460_v38 }
  0xfb   : > { %v465_v58 = vpop.permute.xlu0 %464 }
 0x1c2   : > { %v544_v8 = vpop.f32.mrb[0].mxu0  ;;  %v615_v39 = vpop.f32.mrb[0].mxu1 }
 0x1c3   : > { %v546_v40 = vpop.f32.mrb[1].mxu0  ;;  %v950_v41 = vpop.f32.mrb[1].mxu1  ;;  %v616_v59 = vadd.f32 %v615_v39, %v465_v58  ;;  %v545_v61 = vadd.f32 %v544_v8, %v465_v58 }
 0x1c4   : > { %v547_v63 = vadd.f32 %v546_v40, %v465_v58 }
 0x1cc   : > { %v765_v10 = vpop.f32.mrb[2].mxu1 }
 0x1cd   : > { %v766_v43 = vadd.f32 %v765_v10, %v623_v42  ;;  %v694_v44 = vpop.f32.mrb[2].mxu0  ;;  %v963_v45 = vpop.f32.mrb[3].mxu1 }
 0x1ce   : > { %v695_v46 = vadd.f32 %v694_v44, %v623_v42  ;;  %v696_v47 = vpop.f32.mrb[3].mxu0 }
 0x1cf   : > { %v922_v48 = vmul.f32 -1.442695, %v766_v43  ;;  %v697_v49 = vadd.f32 %v696_v47, %v623_v42 }
 0x1d0   : > { %v920_v50 = vmul.f32 -1.442695, %v695_v46 }
 0x1d1   : > { %1098 = vpow2.f32 %v922_v48  ;;  %v921_v51 = vmul.f32 -1.442695, %v697_v49 }
 0x1d2   : > { %1100 = vpow2.f32 %v920_v50 }
 0x1d3   : > { %1102 = vpow2.f32 %v921_v51 }
 0x1db   : > { %v1099_v52 = vpop.eup %1098 }
 0x1dc   : > { %v1101_v53 = vpop.eup %1100  ;;  %v780_v54 = vadd.f32 1.0, %v1099_v52 }
 0x1dd   : > { %v1103_v55 = vpop.eup %1102  ;;  %v778_v56 = vadd.f32 1.0, %v1101_v53 }
 0x1de   : > { %1104 = vrcp.f32 %v780_v54  ;;  %v779_v57 = vadd.f32 1.0, %v1103_v55 }
 0x1df   : > { %1106 = vrcp.f32 %v778_v56 }
 0x1e0   : > { %1108 = vrcp.f32 %v779_v57 }
 0x1e8   : > { %v1105_v60 = vpop.eup %1104 }
 0x1e9   : > { %v1107_v62 = vpop.eup %1106  ;;  %v789_v0 = vmul.f32 %v1105_v60, %v616_v59 }
 0x1ea   : > { %v1109_v1 = vpop.eup %1108  ;;  %v787_v2 = vmul.f32 %v1107_v62, %v545_v61 }
 0x1eb   : > { %v788_v4 = vmul.f32 %v1109_v1, %v547_v63  ;;  %795 = vst [vmem:[%s305_s14 + $0x8] sm:$0xf] %v789_v0 }
 0x1ed   : > { %v792_v7 = vcombine.low %v787_v2, %v788_v4 }
 0x1ef   : > { %794 = vst [vmem:[%s305_s14] sm:$0xff] %v792_v7 }
 0x1f0   : > { %1183 = shalt.err (!%p1180_p1)
}
 0x1f1   : > { %s1184_s18 = scalar_lea.hbm %s1543_s19, 192  ;;  %s1188_s28 = scalar_lea.hbm %s1593_s6, 384 }
 0x1f2   : > { %p1185_p11 = scmp.ne.s32.totalorder %s1543_s19, %s1184_s18  ;;  %p1189_p4 = scmp.lt.u32.totalorder %s1543_s19, %s1593_s6 }
 0x1f3   : > { %p1190_p10 = scmp.lt.u32.totalorder %s1188_s28, %s1184_s18  ;;  %p1192_p13 = scmp.lt.u32.totalorder %s1184_s18, %s1543_s19 }
 0x1f4   : > { %p1186_p12 = pnand %p1185_p11, %p1605_p3 }
 0x1f5   : > { %p1191_p6 = por %p1190_p10, %p1189_p4 }
 0x1f6   : > { %p1187_p2 = pneg %p1186_p12 }
 0x1f7   : > { %p1193_p5 = por %p1192_p13, %p1191_p6 }
 0x1f9   : > { %p1194_p7 = pnand %p1193_p5, %p1187_p2 }
 0x1fb   : > { %1197 = shalt.err (!%p1194_p7)
}
 0x1fc   : > { %1002 = dma.vmem_to_hbm [thread:$0]  (%p1605_p3), %s1545_s10, 192, %s1543_s19, %s797_s11  }
 0x1fd PF: > { %s823_s14 = sand.u32 1, %s1228_s21   ;;  %p1606_p8 = scmp.ne.s32.totalorder %s1598_s9, 0 }
 0x1fe   : > { %p1607_p9 = scmp.ge.s32.totalorder %s1240_s24, 2  ;;  %s824_s12 = scalar_lea.sflag [#allocation4], %s823_s14 }
 0x200   : > { %p1012_p0 = pnand %p1607_p9, %p1606_p8 }
 0x202   : > { %1223 = dma.done.wait (!%p1012_p0), %s824_s12, 192  }
 0x203   : > { %1225 = vsyncadd (!%p1012_p0), %s824_s12, 4294967104  ;;  %p22_p1 = scmp.ge.s32.totalorder %s1317_s27, 4   ;;  %s1608_s21 = smov %s1232_s22 }
 0x204   : > { %s1609_s22 = smov %s1236_s23  ;;  %s1610_s23 = smov %s1329_s30 }
 0x205   : > { %s1611_s24 = smov %s1317_s27  ;;  %24 = sbr.rel (!%p22_p1) target bundleno = 7 (0x7), region = 102 }
 0x20c   :  { %829 = vsyncpa [#allocation3], 1 }
 0x20d   :  { %831 = vsyncpa [#allocation3 + $0x1], 1 }
 0x20e   :  { %832 = vsyncpa [#allocation6], 1 }
 0x20f   :  { %834 = vsyncpa [#allocation6 + $0x1], 1 }
 0x210   :  { %835 = vsyncpa [#allocation4], 1 }
 0x211   :  { %837 = vsyncpa [#allocation4 + $0x1], 1 }

</bundles_post_ra>
